<compile_context>
chip_gen: v7x
topology: tpu7x:2x2x1
jax: 0.10.0
libtpu: 0.0.40
codegen_flags: <defaults>
</compile_context>

<pallas_src>
import functools

import jax
import jax.numpy as jnp
from jax.experimental import pallas as pl
from jax.experimental.pallas import tpu as pltpu

_LANE_CHOICES = (1024, 512, 256, 128)
_MEGACORE_SPLIT_BYTES = 1 * 1024 * 1024        # split >=1 MiB inputs into >=2 blocks
_DEFAULT_MIN_PALLAS_ELEMENTS = 1 << 17         # below this, plain XLA fuses for free


def _chip_block_config():
    """Return (block_bytes, vmem_limit_bytes) sized per TPU generation."""
    try:
        info = pltpu.get_tpu_info()
        vmem = getattr(info, "vmem_capacity_bytes", None)
        if vmem is not None and vmem >= 96 * 1024 * 1024:
            # v5e / v6e: 128 MiB VMEM -> bigger tiles, fewer ~0.35us grid steps.
            return 8 * 1024 * 1024, 64 * 1024 * 1024
    except Exception:
        pass
    # v7x (64 MiB VMEM per TC) or unknown backend: conservative sizing.
    return 4 * 1024 * 1024, 32 * 1024 * 1024


def _round_up(x, m):
    return ((x + m - 1) // m) * m


def _round_down(x, m):
    return (x // m) * m


def _gmof_kernel(x_ref, o_ref, *, rho_sq, approx_recip):
    # Compute in f32 regardless of storage dtype; cast back on store.
    x = x_ref[...].astype(jnp.float32)
    sq = x * x
    recip = pl.reciprocal(sq + rho_sq, approx=approx_recip)
    if approx_recip:
        # rho^2 - rho^4/(x^2+rho^2) == rho^2*x^2/(x^2+rho^2); one fewer VALU mul
        # and the reciprocal rides the otherwise-idle EUP slot (16-bit path).
        out = rho_sq - (rho_sq * rho_sq) * recip
    else:
        out = (rho_sq * sq) * recip
    o_ref[...] = out.astype(o_ref.dtype)


def _gmof_jnp(residual, rho):
    x = residual.astype(jnp.float32)
    sq = x * x
    rho_sq = float(rho) ** 2
    return ((rho_sq * sq) / (sq + rho_sq)).astype(residual.dtype)


def _gmof_call(kernel, x, block_shape, grid, out_shape, vmem_limit_bytes, cost,
               io_alias):
    if len(block_shape) == 2:
        index_map = lambda i: (i, 0)
    else:
        index_map = lambda i: (i,)
    spec = pl.BlockSpec(block_shape, index_map)
    return pl.pallas_call(
        kernel,
        out_shape=out_shape,
        grid_spec=pltpu.PrefetchScalarGridSpec(
            num_scalar_prefetch=0,
            grid=grid,
            in_specs=[spec],
            out_specs=spec,
        ),
        compiler_params=pltpu.CompilerParams(
            dimension_semantics=("parallel",),
            vmem_limit_bytes=vmem_limit_bytes,
        ),
        cost_estimate=cost,
        input_output_aliases=io_alias,
    )(x)


def gmof(residual: jax.Array,
         rho: float = 1.0,
         *,
         block_bytes: int | None = None,
         vmem_limit_bytes: int | None = None,
         alias_input: bool = False,
         min_pallas_elements: int = _DEFAULT_MIN_PALLAS_ELEMENTS) -> jax.Array:
    """Pallas implementation of GMoF.forward (elementwise, HBM-bound)."""
    orig_shape = residual.shape
    dtype = residual.dtype
    n = int(residual.size)

    # Small-input fast path: launch overhead dominates; let XLA fuse it.
    if n == 0 or n < min_pallas_elements:
        return _gmof_jnp(residual, rho)

    if block_bytes is None or vmem_limit_bytes is None:
        chip_bb, chip_vl = _chip_block_config()
        block_bytes = chip_bb if block_bytes is None else block_bytes
        vmem_limit_bytes = chip_vl if vmem_limit_bytes is None else vmem_limit_bytes

    itemsize = jnp.dtype(dtype).itemsize
    packing = max(1, 4 // itemsize)
    sub_mult = 8 * packing                       # 8 f32 / 16 bf16,fp16 / 32 int8
    approx_recip = bool(jnp.issubdtype(dtype, jnp.floating) and itemsize < 4)
    rho_sq = float(rho) ** 2
    total_bytes = n * itemsize

    kernel = functools.partial(_gmof_kernel, rho_sq=rho_sq,
                               approx_recip=approx_recip)
    cost = pl.CostEstimate(flops=5 * n, transcendentals=n,
                           bytes_accessed=2 * total_bytes)
    io_alias = {0: 0} if alias_input else {}

    flat = residual.reshape(-1)
    lanes = next((l for l in _LANE_CHOICES if n % l == 0), None)

    if lanes is not None:
        # ---- Lane-dense 2-D path (no pad, no slice). ----
        rows = n // lanes
        x2d = flat.reshape(rows, lanes)
        row_bytes = itemsize * lanes
        target_rows = max(sub_mult, _round_down(block_bytes // row_bytes, sub_mult))
        if rows > target_rows:
            block_rows = target_rows                 # ragged last block OK
        elif total_bytes >= _MEGACORE_SPLIT_BYTES and rows >= 2 * sub_mult:
            # >= 2 blocks so the "parallel" axis can shard across v7x's 2 TCs.
            block_rows = _round_up(pl.cdiv(rows, 2), sub_mult)
        else:
            block_rows = rows                        # full-extent single block
        grid = (pl.cdiv(rows, block_rows),)
        out2d = _gmof_call(kernel, x2d, (block_rows, lanes), grid,
                           jax.ShapeDtypeStruct((rows, lanes), dtype),
                           vmem_limit_bytes, cost, io_alias)
        return out2d.reshape(orig_shape)

    # ---- Ragged 1-D path: process the flat array directly; Pallas clips the
    #      last block's DMA and masks its store, so no pad / output slice. ----
    base = 1024 * packing                            # whole packed vregs per block
    target_elems = max(base, _round_down(block_bytes // itemsize, base))
    if n > target_elems:
        block_elems = target_elems
    elif total_bytes >= _MEGACORE_SPLIT_BYTES and n >= 2 * base:
        block_elems = _round_up(pl.cdiv(n, 2), base)
    else:
        block_elems = n                              # full-extent single block
    grid = (pl.cdiv(n, block_elems),)
    out1d = _gmof_call(kernel, flat, (block_elems,), grid,
                       jax.ShapeDtypeStruct((n,), dtype),
                       vmem_limit_bytes, cost, io_alias)
    return out1d.reshape(orig_shape)


def gmof_ref(residual: jax.Array, rho: float = 1.0) -> jax.Array:
    squared_res = residual.astype(jnp.float32) ** 2
    dist = squared_res / (squared_res + float(rho) ** 2)
    return ((float(rho) ** 2) * dist).astype(residual.dtype)


if __name__ == "__main__":
    key = jax.random.PRNGKey(0)
    k1, k2, k3, k4, k5, k6 = jax.random.split(key, 6)
    rho = 1.0

    # 1) Small aligned shape (force the Pallas path so the kernel is exercised).
    x = jax.random.normal(k1, (2, 4, 16, 16), dtype=jnp.float32)
    out = jax.block_until_ready(gmof(x, rho=rho, min_pallas_elements=0))
    assert out.shape == x.shape and out.dtype == x.dtype
    assert jnp.allclose(out, gmof_ref(x, rho=rho), atol=1e-6, rtol=1e-6), \
        "mismatch (aligned small)"

    # 2) Unaligned smplify-x style joint residual -> 1-D ragged path (no pad/slice).
    x2 = jax.random.normal(k2, (3, 21, 3), dtype=jnp.float32)
    out2 = jax.block_until_ready(gmof(x2, rho=rho, min_pallas_elements=0))
    assert jnp.allclose(out2, gmof_ref(x2, rho=rho), atol=1e-6, rtol=1e-6), \
        "mismatch (unaligned 1-D)"

    # 3) Unaligned, multi-block 1-D grid with ragged last block.
    x3 = jax.random.normal(k3, (5, 300, 129), dtype=jnp.float32)
    out3 = jax.block_until_ready(
        gmof(x3, rho=rho, block_bytes=64 * 1024, min_pallas_elements=0))
    assert jnp.allclose(out3, gmof_ref(x3, rho=rho), atol=1e-6, rtol=1e-6), \
        "mismatch (multi-block ragged 1-D)"

    # 4) bf16 input: f32 compute, approx reciprocal on the EUP, cast on store.
    x4 = jax.random.normal(k4, (4, 256, 64), dtype=jnp.bfloat16)
    out4 = jax.block_until_ready(gmof(x4, rho=rho, min_pallas_elements=0))
    assert out4.dtype == jnp.bfloat16
    assert jnp.allclose(out4.astype(jnp.float32),
                        gmof_ref(x4, rho=rho).astype(jnp.float32),
                        atol=2e-2, rtol=2e-2), "mismatch (bf16)"

    # 5) >=1 MiB aligned input -> exercises the >=2-block megacore split path.
    x5 = jax.random.normal(k5, (4, 512, 256), dtype=jnp.float32)
    out5 = jax.block_until_ready(gmof(x5, rho=rho, min_pallas_elements=0))
    assert jnp.allclose(out5, gmof_ref(x5, rho=rho), atol=1e-6, rtol=1e-6), \
        "mismatch (megacore split)"

    # 6) input/output aliasing path (for callers that donate `residual`).
    x6 = jax.random.normal(k6, (2, 4, 16, 16), dtype=jnp.float32)
    ref6 = gmof_ref(x6, rho=rho)
    out6 = jax.block_until_ready(
        gmof(x6, rho=rho, min_pallas_elements=0, alias_input=True))
    assert jnp.allclose(out6, ref6, atol=1e-6, rtol=1e-6), "mismatch (aliased)"

    print("KERNEL_OK")
</pallas_src>

<mosaic_0001>
module attributes {stable_mosaic.version = 11 : i64} {
  func.func @_gmof_kernel(%arg0: i32, %arg1: memref<2x1024xf32, #tpu.memory_space<vmem>>, %arg2: memref<2x1024xf32, #tpu.memory_space<vmem>>) attributes {dimension_semantics = [#tpu.dimension_semantics<parallel>], iteration_bounds = array<i64: 1>, scalar_prefetch = 0 : i64, scratch_operands = 0 : i64, tpu.core_type = #tpu.core_type<tc>, window_params = [{transform_indices = @transform_0, window_bounds = array<i64: 2, 1024>}, {transform_indices = @transform_1, window_bounds = array<i64: 2, 1024>}]} {
    %c0 = arith.constant 0 : index
    %c0_0 = arith.constant 0 : index
    %0 = vector.load %arg1[%c0, %c0_0] : memref<2x1024xf32, #tpu.memory_space<vmem>>, vector<2x1024xf32>
    %1 = arith.mulf %0, %0 : vector<2x1024xf32>
    %cst = arith.constant 1.000000e+00 : f32
    %2 = vector.broadcast %cst : f32 to vector<2x1024xf32>
    %3 = arith.addf %1, %2 : vector<2x1024xf32>
    %4 = tpu.reciprocal %3 : vector<2x1024xf32> -> vector<2x1024xf32>
    %cst_1 = arith.constant 1.000000e+00 : f32
    %5 = vector.broadcast %cst_1 : f32 to vector<2x1024xf32>
    %6 = arith.mulf %5, %1 : vector<2x1024xf32>
    %7 = arith.mulf %6, %4 : vector<2x1024xf32>
    %c0_2 = arith.constant 0 : index
    %c0_3 = arith.constant 0 : index
    %8 = vector.load %arg2[%c0_2, %c0_3] : memref<2x1024xf32, #tpu.memory_space<vmem>>, vector<2x1024xf32>
    tpu.vector_store %arg2[%c0_2, %c0_3], %7 {strides = array<i32>} : memref<2x1024xf32, #tpu.memory_space<vmem>>, vector<2x1024xf32>,
    return
  }
  func.func @transform_0(%arg0: i32) -> (i32, i32) {
    %c0_i32 = arith.constant 0 : i32
    %c0_i32_0 = arith.constant 0 : i32
    return %arg0, %c0_i32 : i32, i32
  }
  func.func @transform_1(%arg0: i32) -> (i32, i32) {
    %c0_i32 = arith.constant 0 : i32
    %c0_i32_0 = arith.constant 0 : i32
    return %arg0, %c0_i32 : i32, i32
  }
}

</mosaic_0001>

<bundles_post_ra>
// kernel: tpu_custom_call.1
= control target key start
LH: loop header
LB: loop body
LE: loop exit
PB: predicated region body
PF: predicated region fallthrough
CT: control target
= control target key end

     0   :  { %6 = vsyncpa [#allocation3], 0  ;;  %s138_s0 = inlined_call_operand.hbm [shape: f32[2,1024], index: 0, kind: input, shape index: {}]   ;;  %s139_s1 = inlined_call_operand.hbm [shape: f32[2,1024], index: 1, kind: output, shape index: {}]  }
   0x1   :  { %7 = vsyncpa [#allocation4], 0  ;;  %s102_s6 = smov [#allocation2]   ;;  %s54_s10 = scalar_lea.hbm %s138_s0, 256 }
   0x2   :  { %s14_s7 = sshll.u32 %s102_s6, 4  ;;  %p55_p0 = scmp.ne.s32.totalorder %s138_s0, %s54_s10  ;;  %s15_s7 = int_to_ptr.vmem [resolvable:$true] %s14_s7 }
   0x3   :  { %p58_p1 = scmp.lt.u32.totalorder %s54_s10, %s138_s0 }
   0x5   :  { %p60_p2 = pnand %p58_p1, %p55_p0 }
   0x7   :  { %63 = shalt.err (!%p60_p2)
}
   0x8   :  { %s64_s15 = scalar_lea.vmem %s15_s7, 256  ;;  %p69_p4 = scmp.lt.s32.totalorder %s15_s7, %s15_s7 }
   0x9   :  { %p65_p3 = scmp.ne.s32.totalorder %s15_s7, %s64_s15  ;;  %p70_p5 = scmp.lt.s32.totalorder %s64_s15, %s64_s15 }
   0xb   :  { %p71_p6 = por %p70_p5, %p69_p4 }
   0xd   :  { %p72_p7 = pnand %p71_p6, %p65_p3 }
   0xf   :  { %75 = shalt.err (!%p72_p7)
}
  0x10   :  { %17 = dma.hbm_to_vmem [thread:$0]  %s138_s0, 256, %s15_s7, [#allocation3]  }
  0x11   :  { %98 = dma.done.wait [#allocation3], 256  }
  0x12   :  { %99 = vsyncadd [#allocation3], 4294967040  ;;  %v21_v0 = vld [vmem:[#allocation2] sm:$0xff]  ;;  %v22_v1 = vld [vmem:[#allocation2 + $0x8] sm:$0xff]  ;;  %s103_s18 = smov [#allocation5]  }
  0x13   :  { %v23_v2 = vmul.f32 %v21_v0, %v21_v0  ;;  %v24_v3 = vmul.f32 %v22_v1, %v22_v1  ;;  %s39_s19 = sshll.u32 %s103_s18, 4  ;;  %s40_s19 = int_to_ptr.vmem [resolvable:$true] %s39_s19 }
  0x14   :  { %s76_s0 = scalar_lea.vmem %s40_s19, 256  ;;  %p81_p9 = scmp.lt.s32.totalorder %s40_s19, %s40_s19 }
  0x15   :  { %v25_v4 = vadd.f32 1.0, %v23_v2  ;;  %v26_v5 = vadd.f32 1.0, %v24_v3  ;;  %p77_p8 = scmp.ne.s32.totalorder %s40_s19, %s76_s0  ;;  %p82_p10 = scmp.lt.s32.totalorder %s76_s0, %s76_s0 }
  0x17   :  { %50 = vrcp.f32 %v25_v4  ;;  %p83_p11 = por %p82_p10, %p81_p9 }
  0x18   :  { %52 = vrcp.f32 %v26_v5 }
  0x19   :  { %p84_p12 = pnand %p83_p11, %p77_p8 }
  0x21   :  { %v51_v6 = vpop.eup %50 }
  0x22   :  { %v53_v7 = vpop.eup %52  ;;  %v29_v8 = vmul.f32 %v51_v6, %v23_v2 }
  0x23   :  { %v30_v9 = vmul.f32 %v53_v7, %v24_v3 }
  0x24   :  { %31 = vst [vmem:[#allocation5] sm:$0xff] %v29_v8 }
  0x25   :  { %32 = vst [vmem:[#allocation5 + $0x8] sm:$0xff] %v30_v9 }
  0x26   :  { %87 = shalt.err (!%p84_p12)
}
  0x27   :  { %s88_s22 = scalar_lea.hbm %s139_s1, 256 }
  0x28   :  { %p89_p13 = scmp.ne.s32.totalorder %s139_s1, %s88_s22  ;;  %p92_p0 = scmp.lt.u32.totalorder %s88_s22, %s139_s1 }
  0x2a   :  { %p94_p1 = pnand %p92_p0, %p89_p13 }
  0x2c   :  { %97 = shalt.err (!%p94_p1)
}
  0x2d   :  { %42 = dma.vmem_to_hbm [thread:$0]  %s40_s19, 256, %s139_s1, [#allocation4]  }
  0x2e   :  { %100 = dma.done.wait [#allocation4], 256  }
  0x2f   :  { %101 = vsyncadd [#allocation4], 4294967040 }
  0x30   :  { %46 = vsyncpa [#allocation3], 1 }
  0x31   :  { %47 = vsyncpa [#allocation4], 1 }

</bundles_post_ra>
